<compile_context>
chip_gen: v7x
topology: tpu7x:2x2x1
jax: 0.10.0
libtpu: 0.0.40
codegen_flags: <defaults>
</compile_context>

<pallas_src>
import functools

import jax
import jax.numpy as jnp
from jax import lax
from jax.experimental import pallas as pl
from jax.experimental.pallas import tpu as pltpu

HIDDEN = 256
LANE = 128


def _round_up(x, m):
    return (x + m - 1) // m * m


def ppo_logits_kernel(x_ref, w1_ref, b1_ref, wp1_ref, bp1_ref, wp2_ref, bp2_ref,
                      logits_ref, m_ref, l_ref, *, n_valid, tile_b):
    """Pass 1: fused 3-layer MLP -> padded logits, plus online column max/sum-exp
    accumulated across the batch grid axis (softmax is over dim=0 == batch)."""
    i = pl.program_id(0)

    @pl.when(i == 0)
    def _():
        m_ref[...] = jnp.full_like(m_ref, -jnp.inf)
        l_ref[...] = jnp.zeros_like(l_ref)

    # MXU matmuls with bf16 inputs, f32 accumulation; bias/ReLU stay f32 (VPU).
    x = x_ref[...].astype(jnp.bfloat16)
    h = jnp.dot(x, w1_ref[...], preferred_element_type=jnp.float32) + b1_ref[...]
    h = jnp.maximum(h, 0.0)
    h = jnp.dot(h.astype(jnp.bfloat16), wp1_ref[...],
                preferred_element_type=jnp.float32) + bp1_ref[...]
    h = jnp.maximum(h, 0.0)
    logits = jnp.dot(h.astype(jnp.bfloat16), wp2_ref[...],
                     preferred_element_type=jnp.float32) + bp2_ref[...]

    # Mask batch-padding rows so they cannot pollute the dim=0 (batch) softmax.
    row = i * tile_b + lax.broadcasted_iota(jnp.int32, logits.shape, 0)
    logits = jnp.where(row < n_valid, logits, -jnp.inf)
    logits_ref[...] = logits

    # Online (flash-style) per-column running max / sum-of-exp.
    m_old = m_ref[...]
    m_new = jnp.maximum(m_old, jnp.max(logits, axis=0, keepdims=True))
    l_ref[...] = (l_ref[...] * jnp.exp(m_old - m_new)
                  + jnp.sum(jnp.exp(logits - m_new), axis=0, keepdims=True))
    m_ref[...] = m_new


def ppo_softmax_kernel(logits_ref, m_ref, l_ref, o_ref):
    """Pass 2: normalize per column (batch-axis softmax), parallel over tiles."""
    e = jnp.exp(logits_ref[...] - m_ref[...])
    o_ref[...] = e * pl.reciprocal(l_ref[...], approx=True)


def ppo_forward(x, params, tile_b=128):
    """Equivalent of PPO.forward(x) == PPO.pi(x, softmax_dim=0)."""
    w1, b1, wp1, bp1, wp2, bp2 = params
    B, in_dim = x.shape
    out_dim = wp2.shape[1]

    # ---- wrapper-side layout plumbing (no compute hoisting) ----------------
    # Lane-pad the narrow head to a full 128-lane tile (dense stores, full MXU tile).
    out_pad = _round_up(max(out_dim, LANE), LANE)
    wp2_p = jnp.pad(wp2, ((0, 0), (0, out_pad - out_dim)))
    bp2_p = jnp.pad(bp2, ((0, 0), (0, out_pad - out_dim)))

    # bf16 MXU inputs (halves weight DMA bytes; f32 accumulate in-kernel).
    w1_b = w1.astype(jnp.bfloat16)
    wp1_b = wp1.astype(jnp.bfloat16)
    wp2_b = wp2_p.astype(jnp.bfloat16)

    # Sublane-pad the batch and tile it over the grid (weights stay resident).
    tile_b = min(tile_b, _round_up(B, 8))
    b_pad = _round_up(B, tile_b)
    x_p = jnp.pad(x, ((0, b_pad - B), (0, 0)))
    grid = (b_pad // tile_b,)

    resident = lambda i: (0, 0)      # weights / biases / m / l live in VMEM for all steps
    batch_tiled = lambda i: (i, 0)

    # Pass 1: MLP -> logits + online batch-axis softmax statistics.
    logits, m, l = pl.pallas_call(
        functools.partial(ppo_logits_kernel, n_valid=B, tile_b=tile_b),
        grid=grid,
        in_specs=[
            pl.BlockSpec((tile_b, in_dim), batch_tiled),
            pl.BlockSpec((in_dim, HIDDEN), resident),
            pl.BlockSpec((1, HIDDEN), resident),
            pl.BlockSpec((HIDDEN, HIDDEN), resident),
            pl.BlockSpec((1, HIDDEN), resident),
            pl.BlockSpec((HIDDEN, out_pad), resident),
            pl.BlockSpec((1, out_pad), resident),
        ],
        out_specs=[
            pl.BlockSpec((tile_b, out_pad), batch_tiled),
            pl.BlockSpec((1, out_pad), resident),
            pl.BlockSpec((1, out_pad), resident),
        ],
        out_shape=[
            jax.ShapeDtypeStruct((b_pad, out_pad), jnp.float32),
            jax.ShapeDtypeStruct((1, out_pad), jnp.float32),
            jax.ShapeDtypeStruct((1, out_pad), jnp.float32),
        ],
        compiler_params=pltpu.CompilerParams(
            dimension_semantics=("arbitrary",)),   # batch axis carries the softmax reduction
    )(x_p, w1_b, b1, wp1_b, bp1, wp2_b, bp2_p)

    # Pass 2: normalize (independent per batch tile -> "parallel").
    probs = pl.pallas_call(
        ppo_softmax_kernel,
        grid=grid,
        in_specs=[
            pl.BlockSpec((tile_b, out_pad), batch_tiled),
            pl.BlockSpec((1, out_pad), resident),
            pl.BlockSpec((1, out_pad), resident),
        ],
        out_specs=pl.BlockSpec((tile_b, out_pad), batch_tiled),
        out_shape=jax.ShapeDtypeStruct((b_pad, out_pad), jnp.float32),
        compiler_params=pltpu.CompilerParams(
            dimension_semantics=("parallel",)),
    )(logits, m, l)

    # Drop batch padding rows and lane-padding columns.
    return probs[:B, :out_dim]


def init_params(key, in_dim, out_dim):
    # Deterministic synthetic init (PyTorch-style uniform fan-in bounds), f32 master copy.
    ks = jax.random.split(key, 6)

    def lin(kw, kb, fan_in, fan_out):
        bound = 1.0 / jnp.sqrt(fan_in)
        w = jax.random.uniform(kw, (fan_in, fan_out), jnp.float32, -bound, bound)
        b = jax.random.uniform(kb, (1, fan_out), jnp.float32, -bound, bound)
        return w, b

    w1, b1 = lin(ks[0], ks[1], in_dim, HIDDEN)
    wp1, bp1 = lin(ks[2], ks[3], HIDDEN, HIDDEN)
    wp2, bp2 = lin(ks[4], ks[5], HIDDEN, out_dim)
    return (w1, b1, wp1, bp1, wp2, bp2)


def reference_forward(x, params):
    # Pure f32 reference of PPO.pi(x, softmax_dim=0).
    w1, b1, wp1, bp1, wp2, bp2 = params
    h = jnp.maximum(x @ w1 + b1, 0.0)
    h = jnp.maximum(h @ wp1 + bp1, 0.0)
    logits = h @ wp2 + bp2
    return jax.nn.softmax(logits, axis=0)  # dim=0, as in the PyTorch module


if __name__ == "__main__":
    in_dim, out_dim, batch = 32, 4, 8

    key = jax.random.PRNGKey(0)
    kx, kp = jax.random.split(key)
    x = jax.random.normal(kx, (batch, in_dim), dtype=jnp.float32)
    params = init_params(kp, in_dim, out_dim)

    out = jax.block_until_ready(ppo_forward(x, params))
    ref = reference_forward(x, params)

    assert out.shape == (batch, out_dim)
    # bf16 MXU inputs + approx reciprocal => relaxed tolerance vs f32 reference.
    assert jnp.allclose(out, ref, atol=2e-2, rtol=2e-2), float(jnp.max(jnp.abs(out - ref)))
    # softmax(dim=0): columns sum to 1 over the batch axis.
    assert jnp.allclose(jnp.sum(out, axis=0), jnp.ones((out_dim,)), atol=1e-2)

    print("KERNEL_OK")
</pallas_src>

<mosaic_0001>
module attributes {stable_mosaic.version = 11 : i64} {
  func.func @ppo_logits_kernel(%arg0: i32, %arg1: memref<8x32xf32, #tpu.memory_space<vmem>>, %arg2: memref<32x256xbf16, #tpu.memory_space<vmem>>, %arg3: memref<1x256xf32, #tpu.memory_space<vmem>>, %arg4: memref<256x256xbf16, #tpu.memory_space<vmem>>, %arg5: memref<1x256xf32, #tpu.memory_space<vmem>>, %arg6: memref<256x128xbf16, #tpu.memory_space<vmem>>, %arg7: memref<1x128xf32, #tpu.memory_space<vmem>>, %arg8: memref<8x128xf32, #tpu.memory_space<vmem>>, %arg9: memref<1x128xf32, #tpu.memory_space<vmem>>, %arg10: memref<1x128xf32, #tpu.memory_space<vmem>>) attributes {dimension_semantics = [#tpu.dimension_semantics<arbitrary>], iteration_bounds = array<i64: 1>, scalar_prefetch = 0 : i64, scratch_operands = 0 : i64, tpu.core_type = #tpu.core_type<tc>, window_params = [{transform_indices = @transform_0, window_bounds = array<i64: 8, 32>}, {pipeline_mode = #tpu.pipeline_mode<synchronous>, transform_indices = @transform_1, window_bounds = array<i64: 32, 256>}, {pipeline_mode = #tpu.pipeline_mode<synchronous>, transform_indices = @transform_2, window_bounds = array<i64: 1, 256>}, {pipeline_mode = #tpu.pipeline_mode<synchronous>, transform_indices = @transform_3, window_bounds = array<i64: 256, 256>}, {pipeline_mode = #tpu.pipeline_mode<synchronous>, transform_indices = @transform_4, window_bounds = array<i64: 1, 256>}, {pipeline_mode = #tpu.pipeline_mode<synchronous>, transform_indices = @transform_5, window_bounds = array<i64: 256, 128>}, {pipeline_mode = #tpu.pipeline_mode<synchronous>, transform_indices = @transform_6, window_bounds = array<i64: 1, 128>}, {transform_indices = @transform_7, window_bounds = array<i64: 8, 128>}, {pipeline_mode = #tpu.pipeline_mode<synchronous>, transform_indices = @transform_8, window_bounds = array<i64: 1, 128>}, {pipeline_mode = #tpu.pipeline_mode<synchronous>, transform_indices = @transform_9, window_bounds = array<i64: 1, 128>}]} {
    %c0_i32 = arith.constant 0 : i32
    %0 = arith.cmpi eq, %arg0, %c0_i32 : i32
    %1 = arith.extui %0 : i1 to i32
    %c0_i32_0 = arith.constant 0 : i32
    %2 = arith.cmpi ne, %1, %c0_i32_0 : i32
    scf.if %2 {
      %cst_32 = arith.constant 0xFF800000 : f32
      %51 = vector.broadcast %cst_32 : f32 to vector<1x128xf32>
      %c0_33 = arith.constant 0 : index
      %c0_34 = arith.constant 0 : index
      %52 = vector.load %arg9[%c0_33, %c0_34] : memref<1x128xf32, #tpu.memory_space<vmem>>, vector<1x128xf32>
      tpu.vector_store %arg9[%c0_33, %c0_34], %51 {strides = array<i32>} : memref<1x128xf32, #tpu.memory_space<vmem>>, vector<1x128xf32>,
      %cst_35 = arith.constant 0.000000e+00 : f32
      %53 = vector.broadcast %cst_35 : f32 to vector<1x128xf32>
      %c0_36 = arith.constant 0 : index
      %c0_37 = arith.constant 0 : index
      %54 = vector.load %arg10[%c0_36, %c0_37] : memref<1x128xf32, #tpu.memory_space<vmem>>, vector<1x128xf32>
      tpu.vector_store %arg10[%c0_36, %c0_37], %53 {strides = array<i32>} : memref<1x128xf32, #tpu.memory_space<vmem>>, vector<1x128xf32>,
    } else {
    }
    %c0 = arith.constant 0 : index
    %c0_1 = arith.constant 0 : index
    %3 = vector.load %arg1[%c0, %c0_1] : memref<8x32xf32, #tpu.memory_space<vmem>>, vector<8x32xf32>
    %4 = arith.truncf %3 : vector<8x32xf32> to vector<8x32xbf16>
    %c0_2 = arith.constant 0 : index
    %c0_3 = arith.constant 0 : index
    %5 = vector.load %arg2[%c0_2, %c0_3] : memref<32x256xbf16, #tpu.memory_space<vmem>>, vector<32x256xbf16>
    %cst = arith.constant dense<0.000000e+00> : vector<8x256xf32>
    %6 = tpu.matmul %4, %5, %cst {dimension_numbers = #tpu.dot_dimension_numbers<[1], [0], [0], [1], [0, 0, 1, 1], [], []>} : vector<8x32xbf16>, vector<32x256xbf16>, vector<8x256xf32> -> vector<8x256xf32>
    %c0_4 = arith.constant 0 : index
    %c0_5 = arith.constant 0 : index
    %7 = vector.load %arg3[%c0_4, %c0_5] : memref<1x256xf32, #tpu.memory_space<vmem>>, vector<1x256xf32>
    %8 = vector.broadcast %7 : vector<1x256xf32> to vector<8x256xf32>
    %9 = arith.addf %6, %8 : vector<8x256xf32>
    %cst_6 = arith.constant 0.000000e+00 : f32
    %10 = vector.broadcast %cst_6 : f32 to vector<8x256xf32>
    %11 = arith.maximumf %9, %10 : vector<8x256xf32>
    %12 = arith.truncf %11 : vector<8x256xf32> to vector<8x256xbf16>
    %c0_7 = arith.constant 0 : index
    %c0_8 = arith.constant 0 : index
    %13 = vector.load %arg4[%c0_7, %c0_8] : memref<256x256xbf16, #tpu.memory_space<vmem>>, vector<256x256xbf16>
    %cst_9 = arith.constant dense<0.000000e+00> : vector<8x256xf32>
    %14 = tpu.matmul %12, %13, %cst_9 {dimension_numbers = #tpu.dot_dimension_numbers<[1], [0], [0], [1], [0, 0, 1, 1], [], []>} : vector<8x256xbf16>, vector<256x256xbf16>, vector<8x256xf32> -> vector<8x256xf32>
    %c0_10 = arith.constant 0 : index
    %c0_11 = arith.constant 0 : index
    %15 = vector.load %arg5[%c0_10, %c0_11] : memref<1x256xf32, #tpu.memory_space<vmem>>, vector<1x256xf32>
    %16 = vector.broadcast %15 : vector<1x256xf32> to vector<8x256xf32>
    %17 = arith.addf %14, %16 : vector<8x256xf32>
    %cst_12 = arith.constant 0.000000e+00 : f32
    %18 = vector.broadcast %cst_12 : f32 to vector<8x256xf32>
    %19 = arith.maximumf %17, %18 : vector<8x256xf32>
    %20 = arith.truncf %19 : vector<8x256xf32> to vector<8x256xbf16>
    %c0_13 = arith.constant 0 : index
    %c0_14 = arith.constant 0 : index
    %21 = vector.load %arg6[%c0_13, %c0_14] : memref<256x128xbf16, #tpu.memory_space<vmem>>, vector<256x128xbf16>
    %cst_15 = arith.constant dense<0.000000e+00> : vector<8x128xf32>
    %22 = tpu.matmul %20, %21, %cst_15 {dimension_numbers = #tpu.dot_dimension_numbers<[1], [0], [0], [1], [0, 0, 1, 1], [], []>} : vector<8x256xbf16>, vector<256x128xbf16>, vector<8x128xf32> -> vector<8x128xf32>
    %c0_16 = arith.constant 0 : index
    %c0_17 = arith.constant 0 : index
    %23 = vector.load %arg7[%c0_16, %c0_17] : memref<1x128xf32, #tpu.memory_space<vmem>>, vector<1x128xf32>
    %24 = vector.broadcast %23 : vector<1x128xf32> to vector<8x128xf32>
    %25 = arith.addf %22, %24 : vector<8x128xf32>
    %c8_i32 = arith.constant 8 : i32
    %26 = arith.muli %arg0, %c8_i32 : i32
    %27 = tpu.iota {dimensions = array<i32: 0>} : vector<8x128xi32>
    %28 = vector.broadcast %26 : i32 to vector<8x128xi32>
    %29 = arith.addi %28, %27 : vector<8x128xi32>
    %c8_i32_18 = arith.constant 8 : i32
    %30 = vector.broadcast %c8_i32_18 : i32 to vector<8x128xi32>
    %31 = arith.cmpi slt, %29, %30 : vector<8x128xi32>
    %cst_19 = arith.constant 0xFF800000 : f32
    %32 = vector.broadcast %cst_19 : f32 to vector<8x128xf32>
    %33 = arith.select %31, %25, %32 : vector<8x128xi1>, vector<8x128xf32>
    %c0_20 = arith.constant 0 : index
    %c0_21 = arith.constant 0 : index
    %34 = vector.load %arg8[%c0_20, %c0_21] : memref<8x128xf32, #tpu.memory_space<vmem>>, vector<8x128xf32>
    tpu.vector_store %arg8[%c0_20, %c0_21], %33 {strides = array<i32>} : memref<8x128xf32, #tpu.memory_space<vmem>>, vector<8x128xf32>,
    %c0_22 = arith.constant 0 : index
    %c0_23 = arith.constant 0 : index
    %35 = vector.load %arg9[%c0_22, %c0_23] : memref<1x128xf32, #tpu.memory_space<vmem>>, vector<1x128xf32>
    %cst_24 = arith.constant dense<0xFF800000> : vector<128xf32>
    %36 = vector.multi_reduction <maximumf>, %33, %cst_24 [0] : vector<8x128xf32> to vector<128xf32>
    %37 = vector.shape_cast %36 : vector<128xf32> to vector<1x128xf32>
    %38 = arith.maximumf %35, %37 : vector<1x128xf32>
    %c0_25 = arith.constant 0 : index
    %c0_26 = arith.constant 0 : index
    %39 = vector.load %arg10[%c0_25, %c0_26] : memref<1x128xf32, #tpu.memory_space<vmem>>, vector<1x128xf32>
    %40 = arith.subf %35, %38 : vector<1x128xf32>
    %41 = math.exp %40 : vector<1x128xf32>
    %42 = arith.mulf %39, %41 : vector<1x128xf32>
    %43 = vector.broadcast %38 : vector<1x128xf32> to vector<8x128xf32>
    %44 = arith.subf %33, %43 : vector<8x128xf32>
    %45 = math.exp %44 : vector<8x128xf32>
    %cst_27 = arith.constant dense<0.000000e+00> : vector<128xf32>
    %46 = vector.multi_reduction <add>, %45, %cst_27 [0] : vector<8x128xf32> to vector<128xf32>
    %47 = vector.shape_cast %46 : vector<128xf32> to vector<1x128xf32>
    %48 = arith.addf %42, %47 : vector<1x128xf32>
    %c0_28 = arith.constant 0 : index
    %c0_29 = arith.constant 0 : index
    %49 = vector.load %arg10[%c0_28, %c0_29] : memref<1x128xf32, #tpu.memory_space<vmem>>, vector<1x128xf32>
    tpu.vector_store %arg10[%c0_28, %c0_29], %48 {strides = array<i32>} : memref<1x128xf32, #tpu.memory_space<vmem>>, vector<1x128xf32>,
    %c0_30 = arith.constant 0 : index
    %c0_31 = arith.constant 0 : index
    %50 = vector.load %arg9[%c0_30, %c0_31] : memref<1x128xf32, #tpu.memory_space<vmem>>, vector<1x128xf32>
    tpu.vector_store %arg9[%c0_30, %c0_31], %38 {strides = array<i32>} : memref<1x128xf32, #tpu.memory_space<vmem>>, vector<1x128xf32>,
    return
  }
  func.func @transform_0(%arg0: i32) -> (i32, i32) {
    %c0_i32 = arith.constant 0 : i32
    %c0_i32_0 = arith.constant 0 : i32
    return %arg0, %c0_i32 : i32, i32
  }
  func.func @transform_1(%arg0: i32) -> (i32, i32) {
    %c0_i32 = arith.constant 0 : i32
    %c0_i32_0 = arith.constant 0 : i32
    %c0_i32_1 = arith.constant 0 : i32
    return %c0_i32, %c0_i32_0 : i32, i32
  }
  func.func @transform_2(%arg0: i32) -> (i32, i32) {
    %c0_i32 = arith.constant 0 : i32
    %c0_i32_0 = arith.constant 0 : i32
    %c0_i32_1 = arith.constant 0 : i32
    return %c0_i32, %c0_i32_0 : i32, i32
  }
  func.func @transform_3(%arg0: i32) -> (i32, i32) {
    %c0_i32 = arith.constant 0 : i32
    %c0_i32_0 = arith.constant 0 : i32
    %c0_i32_1 = arith.constant 0 : i32
    return %c0_i32, %c0_i32_0 : i32, i32
  }
  func.func @transform_4(%arg0: i32) -> (i32, i32) {
    %c0_i32 = arith.constant 0 : i32
    %c0_i32_0 = arith.constant 0 : i32
    %c0_i32_1 = arith.constant 0 : i32
    return %c0_i32, %c0_i32_0 : i32, i32
  }
  func.func @transform_5(%arg0: i32) -> (i32, i32) {
    %c0_i32 = arith.constant 0 : i32
    %c0_i32_0 = arith.constant 0 : i32
    %c0_i32_1 = arith.constant 0 : i32
    return %c0_i32, %c0_i32_0 : i32, i32
  }
  func.func @transform_6(%arg0: i32) -> (i32, i32) {
    %c0_i32 = arith.constant 0 : i32
    %c0_i32_0 = arith.constant 0 : i32
    %c0_i32_1 = arith.constant 0 : i32
    return %c0_i32, %c0_i32_0 : i32, i32
  }
  func.func @transform_7(%arg0: i32) -> (i32, i32) {
    %c0_i32 = arith.constant 0 : i32
    %c0_i32_0 = arith.constant 0 : i32
    return %arg0, %c0_i32 : i32, i32
  }
  func.func @transform_8(%arg0: i32) -> (i32, i32) {
    %c0_i32 = arith.constant 0 : i32
    %c0_i32_0 = arith.constant 0 : i32
    %c0_i32_1 = arith.constant 0 : i32
    return %c0_i32, %c0_i32_0 : i32, i32
  }
  func.func @transform_9(%arg0: i32) -> (i32, i32) {
    %c0_i32 = arith.constant 0 : i32
    %c0_i32_0 = arith.constant 0 : i32
    %c0_i32_1 = arith.constant 0 : i32
    return %c0_i32, %c0_i32_0 : i32, i32
  }
}

</mosaic_0001>

<bundles_post_ra>
// kernel: tpu_custom_call.1
= control target key start
LH: loop header
LB: loop body
LE: loop exit
PB: predicated region body
PF: predicated region fallthrough
CT: control target
= control target key end

     0   :  { %15 = vsyncpa [#allocation3], 0  ;;  %s1181_s0 = inlined_call_operand.hbm [shape: f32[8,32], index: 0, kind: input, shape index: {}]   ;;  %s1182_s1 = inlined_call_operand.hbm [shape: bf16[32,256], index: 1, kind: input, shape index: {}]   ;;  %s1183_s2 = inlined_call_operand.vmem [shape: f32[1,256], index: 2, kind: input, shape index: {}]   ;;  %s1184_s3 = inlined_call_operand.hbm [shape: bf16[256,256], index: 3, kind: input, shape index: {}]   ;;  %s1185_s4 = inlined_call_operand.vmem [shape: f32[1,256], index: 4, kind: input, shape index: {}]   ;;  %s1186_s5 = inlined_call_operand.hbm [shape: bf16[256,128], index: 5, kind: input, shape index: {}]   ;;  %s1187_s6 = inlined_call_operand.vmem [shape: f32[1,128], index: 6, kind: input, shape index: {}]   ;;  %s1188_s7 = inlined_call_operand.hbm [shape: f32[8,128], index: 7, kind: output, shape index: {0}]   ;;  %s1189_s8 = inlined_call_operand.hbm [shape: f32[1,128], index: 8, kind: output, shape index: {1}]   ;;  %s1190_s9 = inlined_call_operand.hbm [shape: f32[1,128], index: 9, kind: output, shape index: {2}]  }
   0x1   :  { %16 = vsyncpa [#allocation6], 0 }
   0x2   :  { %17 = vsyncpa [#allocation9], 0 }
   0x3   :  { %18 = vsyncpa [#allocation4], 0 }
   0x4   :  { %19 = vsyncpa [#allocation12], 0  ;;  %s1013_s30 = smov [#allocation5]   ;;  %s849_s13 = scalar_lea.hbm %s1182_s1, 512 }
   0x5   :  { %s35_s10 = sshll.u32 %s1013_s30, 4  ;;  %p850_p0 = scmp.ne.s32.totalorder %s1182_s1, %s849_s13  ;;  %s36_s10 = int_to_ptr.vmem [resolvable:$true] %s35_s10 }
   0x6   :  { %p853_p1 = scmp.lt.u32.totalorder %s849_s13, %s1182_s1 }
   0x8   :  { %p855_p2 = pnand %p853_p1, %p850_p0 }
   0xa   :  { %858 = shalt.err (!%p855_p2)
}
   0xb   :  { %s859_s18 = scalar_lea.vmem %s36_s10, 512  ;;  %p864_p4 = scmp.lt.s32.totalorder %s36_s10, %s36_s10 }
   0xc   :  { %p860_p3 = scmp.ne.s32.totalorder %s36_s10, %s859_s18  ;;  %p865_p5 = scmp.lt.s32.totalorder %s859_s18, %s859_s18 }
   0xe   :  { %p866_p6 = por %p865_p5, %p864_p4 }
  0x10   :  { %p867_p7 = pnand %p866_p6, %p860_p3 }
  0x12   :  { %870 = shalt.err (!%p867_p7)
}
  0x13   :  { %s1014_s19 = smov 128   ;;  %s1015_s20 = smov 8  }
  0x14   :  { %41 = dma.hbm_to_vmem [thread:$0]  %s1182_s1, 512, %s36_s10, [#allocation6], %s1014_s19, %s1014_s19, %s1015_s20  }
  0x15   :  { %s1016_s23 = smov [#allocation2]   ;;  %s1017_s25 = smov [#allocation7]  }
  0x16   :  { %s26_s24 = sshll.u32 %s1016_s23, 4  ;;  %s49_s26 = sshll.u32 %s1017_s25, 4  ;;  %s27_s24 = int_to_ptr.vmem [resolvable:$true] %s26_s24  ;;  %s50_s26 = int_to_ptr.vmem [resolvable:$true] %s49_s26 }
  0x17   :  { %s871_s29 = scalar_lea.hbm %s1181_s0, 128 }
  0x18   :  { %p872_p8 = scmp.ne.s32.totalorder %s1181_s0, %s871_s29  ;;  %p875_p9 = scmp.lt.u32.totalorder %s871_s29, %s1181_s0 }
  0x1a   :  { %p877_p10 = pnand %p875_p9, %p872_p8 }
  0x1c   :  { %880 = shalt.err (!%p877_p10)
}
  0x1d   :  { %s881_s1 = scalar_lea.vmem %s27_s24, 128  ;;  %p886_p12 = scmp.lt.s32.totalorder %s27_s24, %s27_s24 }
  0x1e   :  { %p882_p11 = scmp.ne.s32.totalorder %s27_s24, %s881_s1  ;;  %p887_p13 = scmp.lt.s32.totalorder %s881_s1, %s881_s1 }
  0x20   :  { %p888_p0 = por %p887_p13, %p886_p12 }
  0x22   :  { %p889_p1 = pnand %p888_p0, %p882_p11 }
  0x24   :  { %892 = shalt.err (!%p889_p1)
}
  0x25   :  { %29 = dma.hbm_to_vmem [thread:$0]  %s1181_s0, 128, %s27_s24, [#allocation3]  }
  0x26   :  { %s893_s17 = scalar_lea.hbm %s1184_s3, 4096 }
  0x27   :  { %p894_p2 = scmp.ne.s32.totalorder %s1184_s3, %s893_s17  ;;  %p897_p3 = scmp.lt.u32.totalorder %s893_s17, %s1184_s3 }
  0x29   :  { %p899_p4 = pnand %p897_p3, %p894_p2 }
  0x2b   :  { %902 = shalt.err (!%p899_p4)
}
  0x2c   :  { %s903_s25 = scalar_lea.vmem %s50_s26, 4096  ;;  %p908_p6 = scmp.lt.s32.totalorder %s50_s26, %s50_s26 }
  0x2d   :  { %p904_p5 = scmp.ne.s32.totalorder %s50_s26, %s903_s25  ;;  %p909_p7 = scmp.lt.s32.totalorder %s903_s25, %s903_s25 }
  0x2f   :  { %p910_p8 = por %p909_p7, %p908_p6 }
  0x31   :  { %p911_p9 = pnand %p910_p8, %p904_p5 }
  0x33   :  { %914 = shalt.err (!%p911_p9)
}
  0x34   :  { %55 = dma.hbm_to_vmem [thread:$0]  %s1184_s3, 4096, %s50_s26, [#allocation6], %s1014_s19, %s1014_s19, %s1015_s20  }
  0x35   :  { %s1018_s27 = smov [#allocation8]   ;;  %s915_s11 = scalar_lea.hbm %s1186_s5, 2048 }
  0x36   :  { %s63_s28 = sshll.u32 %s1018_s27, 4  ;;  %p916_p10 = scmp.ne.s32.totalorder %s1186_s5, %s915_s11  ;;  %s64_s28 = int_to_ptr.vmem [resolvable:$true] %s63_s28 }
  0x37   :  { %p919_p11 = scmp.lt.u32.totalorder %s915_s11, %s1186_s5 }
  0x39   :  { %p921_p12 = pnand %p919_p11, %p916_p10 }
  0x3b   :  { %924 = shalt.err (!%p921_p12)
}
  0x3c   :  { %s925_s14 = scalar_lea.vmem %s64_s28, 2048  ;;  %p930_p0 = scmp.lt.s32.totalorder %s64_s28, %s64_s28 }
  0x3d   :  { %p926_p13 = scmp.ne.s32.totalorder %s64_s28, %s925_s14  ;;  %p931_p1 = scmp.lt.s32.totalorder %s925_s14, %s925_s14 }
  0x3f   :  { %p932_p2 = por %p931_p1, %p930_p0 }
  0x41   :  { %p933_p3 = pnand %p932_p2, %p926_p13 }
  0x43   :  { %936 = shalt.err (!%p933_p3)
}
  0x44   :  { %s1019_s3 = smov 64   ;;  %s1020_s19 = smov 4  }
  0x45   :  { %69 = dma.hbm_to_vmem [thread:$0]  %s1186_s5, 2048, %s64_s28, [#allocation9], %s1019_s3, %s1019_s3, %s1020_s19  }
  0x46   :  { %1003 = dma.done.wait [#allocation3], 128  }
  0x47   :  { %1004 = vsyncadd [#allocation3], 4294967168 }
  0x48   :  { %1005 = dma.done.wait [#allocation6], 4608  }
  0x49   :  { %1006 = vsyncadd [#allocation6], 4294962688 }
  0x4a   :  { %1007 = dma.done.wait [#allocation9], 2048  }
  0x4b   :  { %1008 = vsyncadd [#allocation9], 4294965248  ;;  %v1021_v0 = vmov 0   ;;  %v775_v1 = vld [vmem:[#allocation5 + $0x4] ss:$8 sps:$4 sm:$0xff]   ;;  %v91_v5 = vld [vmem:[#allocation2] sm:$0xff]  ;;  %v99_v51 = vlaneseq }
  0x4c   :  { %165 = vmatprep.mubr.bf16.mxu0 %v1021_v0  ;;  %v777_v2 = vld [vmem:[#allocation5] ss:$8 sps:$4 sm:$0xff]   ;;  %133 = vmatprep.subr.bf16.mxu0 %v775_v1  ;;  %v778_v3 = vld [vmem:[#allocation5 + $0x14] ss:$8 sps:$4 sm:$0xff]   ;;  %v780_v4 = vld [vmem:[#allocation5 + $0x10] ss:$8 sps:$4 sm:$0xff]   ;;  %v92_v9 = vpack.c.bf16 %v91_v5, %v91_v5 }
  0x4d   :  { %134 = vmatpush1.bf16.msra.mxu0 %v777_v2  ;;  %v781_v6 = vld [vmem:[#allocation7 + $0x4] ss:$8 sps:$4 sm:$0xff]   ;;  %v783_v7 = vld [vmem:[#allocation7] ss:$8 sps:$4 sm:$0xff]   ;;  %v784_v8 = vld [vmem:[#allocation7 + $0x14] ss:$8 sps:$4 sm:$0xff]  }
  0x4e   :  { %135 = vmatprep.subr.bf16.mxu0 %v778_v3  ;;  %382 = vmatprep.subr.bf16.mxu1 %v781_v6  ;;  %v786_v10 = vld [vmem:[#allocation7 + $0x10] ss:$8 sps:$4 sm:$0xff]   ;;  %vm129_vm0 = vcmask 261120   ;;  %v787_v11 = vld [vmem:[#allocation7 + $0x24] ss:$8 sps:$4 sm:$0xff]   ;;  %v100_v52 = vshrl.u32 %v99_v51, 7 }
  0x4f   :  { %383 = vmatpush1.bf16.msra.mxu1 %v783_v7  ;;  %v789_v12 = vld [vmem:[#allocation7 + $0x20] ss:$8 sps:$4 sm:$0xff]   ;;  %v790_v13 = vld [vmem:[#allocation7 + $0x34] ss:$8 sps:$4 sm:$0xff]   ;;  %v792_v14 = vld [vmem:[#allocation7 + $0x30] ss:$8 sps:$4 sm:$0xff]  }
  0x50   :  { %384 = vmatprep.subr.bf16.mxu1 %v784_v8  ;;  %v793_v15 = vld [vmem:[#allocation7 + $0x44] ss:$8 sps:$4 sm:$0xff]   ;;  %v795_v16 = vld [vmem:[#allocation7 + $0x40] ss:$8 sps:$4 sm:$0xff]   ;;  %v796_v17 = vld [vmem:[#allocation7 + $0x54] ss:$8 sps:$4 sm:$0xff]  }
  0x51   :  { %136 = vmatpush1.bf16.msra.mxu0 %v780_v4  ;;  %v798_v18 = vld [vmem:[#allocation7 + $0x50] ss:$8 sps:$4 sm:$0xff]   ;;  %v799_v19 = vld [vmem:[#allocation7 + $0x64] ss:$8 sps:$4 sm:$0xff]   ;;  %v801_v20 = vld [vmem:[#allocation7 + $0x60] ss:$8 sps:$4 sm:$0xff]  }
  0x52   :  { %v802_v21 = vld [vmem:[#allocation7 + $0x74] ss:$8 sps:$4 sm:$0xff]   ;;  %v804_v22 = vld [vmem:[#allocation7 + $0x70] ss:$8 sps:$4 sm:$0xff]   ;;  %v805_v23 = vld [vmem:[#allocation7 + $0x84] ss:$8 sps:$4 sm:$0xff]  }
  0x53   :  { %385 = vmatpush1.bf16.msra.mxu1 %v786_v10  ;;  %v807_v24 = vld [vmem:[#allocation7 + $0x80] ss:$8 sps:$4 sm:$0xff]   ;;  %v808_v25 = vld [vmem:[#allocation7 + $0x94] ss:$8 sps:$4 sm:$0xff]   ;;  %v810_v26 = vld [vmem:[#allocation7 + $0x90] ss:$8 sps:$4 sm:$0xff]  }
  0x54   :  { %689 = vmatmul.mubr.msk.bf16.vlgmr.msra.gmra.mrb[0].mxu0 %vm129_vm0, %v92_v9  ;;  %386 = vmatprep.subr.bf16.mxu1 %v787_v11  ;;  %v811_v27 = vld [vmem:[#allocation7 + $0xa4] ss:$8 sps:$4 sm:$0xff]   ;;  %v813_v28 = vld [vmem:[#allocation7 + $0xa0] ss:$8 sps:$4 sm:$0xff]   ;;  %v814_v29 = vld [vmem:[#allocation7 + $0xb4] ss:$8 sps:$4 sm:$0xff]  }
  0x55   :  { %v816_v30 = vld [vmem:[#allocation7 + $0xb0] ss:$8 sps:$4 sm:$0xff]   ;;  %v817_v31 = vld [vmem:[#allocation7 + $0xc4] ss:$8 sps:$4 sm:$0xff]   ;;  %v819_v32 = vld [vmem:[#allocation7 + $0xc0] ss:$8 sps:$4 sm:$0xff]  }
  0x56   :  { %v820_v33 = vld [vmem:[#allocation7 + $0xd4] ss:$8 sps:$4 sm:$0xff]   ;;  %v822_v34 = vld [vmem:[#allocation7 + $0xd0] ss:$8 sps:$4 sm:$0xff]   ;;  %v823_v35 = vld [vmem:[#allocation7 + $0xe4] ss:$8 sps:$4 sm:$0xff]  }
  0x57   :  { %387 = vmatpush1.bf16.msra.mxu1 %v789_v12  ;;  %v825_v36 = vld [vmem:[#allocation7 + $0xe0] ss:$8 sps:$4 sm:$0xff]   ;;  %v826_v37 = vld [vmem:[#allocation7 + $0xf4] ss:$8 sps:$4 sm:$0xff]   ;;  %v828_v38 = vld [vmem:[#allocation7 + $0xf0] ss:$8 sps:$4 sm:$0xff]  }
  0x58   :  { %388 = vmatprep.subr.bf16.mxu1 %v790_v13  ;;  %v829_v39 = vld [vmem:[#allocation8 + $0x40] sm:$0xff]   ;;  %v831_v41 = vld [vmem:[#allocation8 + $0x48] sm:$0xff]   ;;  %v833_v43 = vld [vmem:[#allocation8 + $0x50] sm:$0xff]   ;;  %v1131_v53 = vsub.s32 0, %v100_v52  ;;  %v105_v55 = vsub.s32 1, %v100_v52  ;;  %s1024_s18 = smov [#allocation10]  }
  0x59   :  { %v830_v40 = vld [vmem:[#allocation8] sm:$0xff]   ;;  %739 = vmatprep.subr.bf16.mxu0 %v829_v39  ;;  %v832_v42 = vld [vmem:[#allocation8 + $0x8] sm:$0xff]   ;;  %v834_v44 = vld [vmem:[#allocation8 + $0x10] sm:$0xff]   ;;  %s647_s21 = sshll.u32 %s1024_s18, 4  ;;  %s648_s21 = int_to_ptr.vmem [resolvable:$true] %s647_s21 }
  0x5a   :  { %740 = vmatpush3.bf16.msra.mxu0 %v830_v40  ;;  %v835_v45 = vld [vmem:[#allocation8 + $0x58] sm:$0xff]   ;;  %v837_v47 = vld [vmem:[#allocation8 + $0x60] sm:$0xff]   ;;  %v839_v49 = vld [vmem:[#allocation8 + $0x68] sm:$0xff]   ;;  %s937_s22 = scalar_lea.vmem %s648_s21, 128  ;;  %p942_p5 = scmp.lt.s32.totalorder %s648_s21, %s648_s21 }
  0x5b   :  { %389 = vmatpush1.bf16.msra.mxu1 %v792_v14  ;;  %741 = vmatprep.subr.bf16.mxu0 %v831_v41  ;;  %v836_v46 = vld [vmem:[#allocation8 + $0x18] sm:$0xff]   ;;  %v838_v48 = vld [vmem:[#allocation8 + $0x20] sm:$0xff]   ;;  %v840_v50 = vld [vmem:[#allocation8 + $0x28] sm:$0xff]   ;;  %p938_p4 = scmp.ne.s32.totalorder %s648_s21, %s937_s22  ;;  %p943_p6 = scmp.lt.s32.totalorder %s937_s22, %s937_s22 }
  0x5c   :  { %390 = vmatprep.subr.bf16.mxu1 %v793_v15  ;;  %v97_v54 = vld [vmem:[%s1183_s2] sm:$0x3]  ;;  %v841_v4 = vld [vmem:[#allocation8 + $0x70] sm:$0xff]  }
  0x5d   :  { %v102_v56 = vrot.slane %v97_v54, %v1131_v53  ;;  %v106_v57 = vrot.slane %v97_v54, %v105_v55  ;;  %v842_v5 = vld [vmem:[#allocation8 + $0x30] sm:$0xff]   ;;  %v843_v6 = vld [vmem:[#allocation8 + $0x78] sm:$0xff]   ;;  %p944_p7 = por %p943_p6, %p942_p5 }
  0x5e   :  { %742 = vmatpush3.bf16.msra.mxu0 %v832_v42  ;;  %v844_v7 = vld [vmem:[#allocation8 + $0x38] sm:$0xff]  }
  0x5f   :  { %391 = vmatpush1.bf16.msra.mxu1 %v795_v16  ;;  %743 = vmatprep.subr.bf16.mxu0 %v833_v43  ;;  %v210_v8 = vld [vmem:[%s1185_s4] sm:$0x3]  ;;  %p945_p8 = pnand %p944_p7, %p938_p4 }
  0x60   :  { %392 = vmatprep.subr.bf16.mxu1 %v796_v17  ;;  %v215_v9 = vrot.slane %v210_v8, %v1131_v53  ;;  %v219_v10 = vrot.slane %v210_v8, %v105_v55 }
  0x62   :  { %744 = vmatpush3.bf16.msra.mxu0 %v834_v44 }
  0x63   :  { %393 = vmatpush1.bf16.msra.mxu1 %v798_v18  ;;  %745 = vmatprep.subr.bf16.mxu0 %v835_v45 }
  0x64   :  { %394 = vmatprep.subr.bf16.mxu1 %v799_v19 }
  0x66   :  { %746 = vmatpush3.bf16.msra.mxu0 %v836_v46 }
  0x67   :  { %395 = vmatpush1.bf16.msra.mxu1 %v801_v20  ;;  %747 = vmatprep.subr.bf16.mxu0 %v837_v47 }
  0x68   :  { %396 = vmatprep.subr.bf16.mxu1 %v802_v21  ;;  %v1022_v21 = vmov -inf  }
  0x69   :  { %89 = vst [vmem:[#allocation11] sm:$0x1] %v1022_v21 }
  0x6a   :  { %748 = vmatpush3.bf16.msra.mxu0 %v838_v48 }
  0x6b   :  { %397 = vmatpush1.bf16.msra.mxu1 %v804_v22  ;;  %749 = vmatprep.subr.bf16.mxu0 %v839_v49  ;;  %v1023_v22 = vmov 0.0  }
  0x6c   :  { %398 = vmatprep.subr.bf16.mxu1 %v805_v23  ;;  %90 = vst [vmem:[#allocation13] sm:$0x1] %v1023_v22 }
  0x6e   :  { %750 = vmatpush3.bf16.msra.mxu0 %v840_v50 }
  0x6f   :  { %399 = vmatpush1.bf16.msra.mxu1 %v807_v24  ;;  %751 = vmatprep.subr.bf16.mxu0 %v841_v4  ;;  %v722_v24 = vld [vmem:[%s1187_s6] ss:$0 sm:$0xff] }
  0x70   :  { %400 = vmatprep.subr.bf16.mxu1 %v808_v25 }
  0x72   :  { %752 = vmatpush3.bf16.msra.mxu0 %v842_v5 }
  0x73   :  { %401 = vmatpush1.bf16.msra.mxu1 %v810_v26  ;;  %753 = vmatprep.subr.bf16.mxu0 %v843_v6 }
  0x74   :  { %402 = vmatprep.subr.bf16.mxu1 %v811_v27 }
  0x76   :  { %754 = vmatpush3.bf16.msra.mxu0 %v844_v7 }
  0x77   :  { %403 = vmatpush1.bf16.msra.mxu1 %v813_v28 }
  0x78   :  { %404 = vmatprep.subr.bf16.mxu1 %v814_v29 }
  0x7b   :  { %405 = vmatpush1.bf16.msra.mxu1 %v816_v30 }
  0x7c   :  { %406 = vmatprep.subr.bf16.mxu1 %v817_v31 }
  0x7f   :  { %407 = vmatpush1.bf16.msra.mxu1 %v819_v32 }
  0x80   :  { %408 = vmatprep.subr.bf16.mxu1 %v820_v33 }
  0x83   :  { %409 = vmatpush1.bf16.msra.mxu1 %v822_v34 }
  0x84   :  { %410 = vmatprep.subr.bf16.mxu1 %v823_v35 }
  0x87   :  { %411 = vmatpush1.bf16.msra.mxu1 %v825_v36 }
  0x88   :  { %412 = vmatprep.subr.bf16.mxu1 %v826_v37 }
  0x8b   :  { %413 = vmatpush1.bf16.msra.mxu1 %v828_v38 }
 0x127   :  { %v167_v58 = vpop.f32.mrb[0].mxu0 }
 0x128   :  { %v168_v59 = vadd.f32 %v167_v58, %v102_v56  ;;  %v169_v60 = vpop.f32.mrb[1].mxu0 }
 0x129   :  { %v170_v61 = vadd.f32 %v169_v60, %v106_v57  ;;  %v171_v62 = vpop.f32.mrb[2].mxu0 }
 0x12a   :  { %v174_v63 = vmax.f32 %v168_v59, 0.0  ;;  %v172_v0 = vpop.f32.mrb[3].mxu0 }
 0x12b   :  { %v175_v1 = vmax.f32 %v170_v61, 0.0 }
 0x12c   :  { %v176_v3 = vpack.c.bf16 %v174_v63, %v174_v63 }
 0x12d   :  { %v177_v2 = vpack.c.bf16 %v175_v1, %v175_v1 }
 0x12f   :  { %414 = vmatprep.mubr.bf16.mxu1 %v177_v2 }
 0x130   :  { %415 = vmatmul.mubr.bf16.vlgmr.msra.gmra.mrb[0].mxu1 %v176_v3 }
 0x203   :  { %v416_v11 = vpop.f32.mrb[0].mxu1 }
 0x204   :  { %v417_v12 = vadd.f32 %v416_v11, %v215_v9  ;;  %v418_v13 = vpop.f32.mrb[1].mxu1 }
 0x205   :  { %v419_v14 = vadd.f32 %v418_v13, %v219_v10  ;;  %v420_v15 = vpop.f32.mrb[2].mxu1 }
 0x206   :  { %v423_v16 = vmax.f32 %v417_v12, 0.0  ;;  %v421_v17 = vpop.f32.mrb[3].mxu1 }
 0x207   :  { %v424_v18 = vmax.f32 %v419_v14, 0.0 }
 0x208   :  { %v425_v20 = vpack.c.bf16 %v423_v16, %v423_v16 }
 0x209   :  { %v426_v19 = vpack.c.bf16 %v424_v18, %v424_v18 }
 0x20b   :  { %594 = vmatprep.mubr.bf16.mxu0 %v426_v19 }
 0x20c   :  { %595 = vmatmul.mubr.bf16.vlgmr.msra.gmra.mrb[4].mxu0 %v425_v20 }
 0x2df   :  { %v755_v23 = vpop.f32.mrb[4].mxu0 }
 0x2e0   :  { %v756_v25 = vpop.f32.mrb[5].mxu0 }
 0x2e1   :  { %v757_v26 = vadd.f32 %v756_v25, %v755_v23  ;;  %v758_v27 = vpop.f32.mrb[6].mxu0 }
 0x2e2   :  { %v759_v28 = vpop.f32.mrb[7].mxu0 }
 0x2e3   :  { %v597_v29 = vadd.f32 %v757_v26, %v722_v24 }
 0x2e5   :  { %v611_v30 = vrot.slane %v597_v29, 4  ;;  %609 = vst [vmem:[#allocation10] sm:$0xff] %v597_v29 }
 0x2e6   :  { %948 = shalt.err (!%p945_p8)
}
 0x2e7   :  { %s949_s6 = scalar_lea.hbm %s1188_s7, 128 }
 0x2e8   :  { %p950_p9 = scmp.ne.s32.totalorder %s1188_s7, %s949_s6  ;;  %p953_p10 = scmp.lt.u32.totalorder %s949_s6, %s1188_s7 }
 0x2ea   :  { %p955_p11 = pnand %p953_p10, %p950_p9 }
 0x2ec   :  { %958 = shalt.err (!%p955_p11)
}
 0x2ed   :  { %650 = dma.vmem_to_hbm [thread:$0]  %s648_s21, 128, %s1188_s7, [#allocation4]   ;;  %v612_v31 = vmax.f32 %v597_v29, %v611_v30  ;;  %v610_v35 = vld [vmem:[#allocation11] sm:$0x1] }
 0x2ee   :  { %s1025_s11 = smov [#allocation11]  }
 0x2ef   :  { %v613_v32 = vrot.slane %v612_v31, 2  ;;  %s657_s12 = sshll.u32 %s1025_s11, 4  ;;  %s658_s12 = int_to_ptr.vmem [resolvable:$true] %s657_s12 }
 0x2f0   :  { %s959_s13 = scalar_lea.vmem %s658_s12, 16  ;;  %s963_s1 = scalar_lea.vmem %s658_s12, 32 }
 0x2f1   :  { %v614_v33 = vmax.f32 %v612_v31, %v613_v32  ;;  %p960_p12 = scmp.ne.s32.totalorder %s658_s12, %s959_s13  ;;  %p964_p13 = scmp.lt.s32.totalorder %s658_s12, %s658_s12 }
 0x2f2   :  { %p965_p0 = scmp.lt.s32.totalorder %s963_s1, %s959_s13 }
 0x2f3   :  { %v615_v34 = vrot.slane %v614_v33, 1 }
 0x2f4   :  { %p966_p1 = por %p965_p0, %p964_p13 }
 0x2f5   :  { %v616_v36 = vmax.f32 %v614_v33, %v615_v34 }
 0x2f6   :  { %p967_p2 = pnand %p966_p1, %p960_p12 }
 0x2f7   :  { %v617_v37 = vmax.f32 %v610_v35, %v616_v36 }
 0x2f9   :  { %v627_v38 = vrot.slane %v617_v37, %v1131_v53  ;;  %640 = vst [vmem:[#allocation11] sm:$0x1] %v617_v37 }
 0x2fa   :  { %970 = shalt.err (!%p967_p2)
}
 0x2fb   :  { %s971_s14 = scalar_lea.hbm %s1189_s8, 16 }
 0x2fc   :  { %p972_p3 = scmp.ne.s32.totalorder %s1189_s8, %s971_s14  ;;  %p975_p4 = scmp.lt.u32.totalorder %s971_s14, %s1189_s8 }
 0x2fe   :  { %p977_p5 = pnand %p975_p4, %p972_p3 }
 0x300   :  { %980 = shalt.err (!%p977_p5)
}
 0x301   :  { %660 = dma.vmem_to_hbm [thread:$0]  %s658_s12, 16, %s1189_s8, [#allocation12]   ;;  %v629_v39 = vsub.f32 %v597_v29, %v627_v38  ;;  %v619_v41 = vsub.f32 %v610_v35, %v617_v37  ;;  %v618_v49 = vld [vmem:[#allocation13] sm:$0x1] }
 0x302   :  { %s1026_s2 = smov [#allocation13]  }
 0x303   :  { %v630_v40 = vmul.f32 1.442695, %v629_v39  ;;  %v620_v42 = vmul.f32 1.442695, %v619_v41  ;;  %s667_s16 = sshll.u32 %s1026_s2, 4  ;;  %s668_s16 = int_to_ptr.vmem [resolvable:$true] %s667_s16 }
 0x304   :  { %s981_s8 = scalar_lea.vmem %s668_s16, 16  ;;  %s985_s4 = scalar_lea.vmem %s668_s16, 32 }
 0x305   :  { %845 = vpow2.f32 %v630_v40  ;;  %p982_p6 = scmp.ne.s32.totalorder %s668_s16, %s981_s8  ;;  %p986_p7 = scmp.lt.s32.totalorder %s668_s16, %s668_s16 }
 0x306   :  { %847 = vpow2.f32 %v620_v42  ;;  %p987_p8 = scmp.lt.s32.totalorder %s985_s4, %s981_s8 }
 0x308   :  { %p988_p9 = por %p987_p8, %p986_p7 }
 0x30a   :  { %p989_p10 = pnand %p988_p9, %p982_p6 }
 0x30f   :  { %v846_v43 = vpop.eup %845 }
 0x310   :  { %v632_v44 = vrot.slane %v846_v43, 4  ;;  %v848_v48 = vpop.eup %847 }
 0x311   :  { %v622_v51 = vmul.f32 %v848_v48, %v618_v49 }
 0x312   :  { %v633_v45 = vadd.f32 %v846_v43, %v632_v44 }
 0x314   :  { %v634_v46 = vrot.slane %v633_v45, 2 }
 0x316   :  { %v635_v47 = vadd.f32 %v634_v46, %v633_v45 }
 0x318   :  { %v636_v50 = vrot.slane %v635_v47, 1 }
 0x31a   :  { %v637_v52 = vadd.f32 %v636_v50, %v635_v47 }
 0x31c   :  { %v638_v53 = vadd.f32 %v637_v52, %v622_v51 }
 0x31e   :  { %639 = vst [vmem:[#allocation13] sm:$0x1] %v638_v53 }
 0x31f   :  { %992 = shalt.err (!%p989_p10)
}
 0x320   :  { %s993_s21 = scalar_lea.hbm %s1190_s9, 16 }
 0x321   :  { %p994_p11 = scmp.ne.s32.totalorder %s1190_s9, %s993_s21  ;;  %p997_p12 = scmp.lt.u32.totalorder %s993_s21, %s1190_s9 }
 0x323   :  { %p999_p13 = pnand %p997_p12, %p994_p11 }
 0x325   :  { %1002 = shalt.err (!%p999_p13)
}
 0x326   :  { %670 = dma.vmem_to_hbm [thread:$0]  %s668_s16, 16, %s1190_s9, [#allocation12]  }
 0x327   :  { %1009 = dma.done.wait [#allocation4], 128  }
 0x328   :  { %1010 = vsyncadd [#allocation4], 4294967168 }
 0x329   :  { %1011 = dma.done.wait [#allocation12], 32  }
 0x32a   :  { %1012 = vsyncadd [#allocation12], 4294967264 }
 0x32b   :  { %680 = vsyncpa [#allocation3], 1 }
 0x32c   :  { %681 = vsyncpa [#allocation6], 1 }
 0x32d   :  { %682 = vsyncpa [#allocation9], 1 }
 0x32e   :  { %683 = vsyncpa [#allocation4], 1 }
 0x32f   :  { %684 = vsyncpa [#allocation12], 1 }

</bundles_post_ra>
